<compile_context>
chip_gen: v7x
topology: tpu7x:2x2x1
jax: 0.10.0
libtpu: 0.0.40
codegen_flags: <defaults>
</compile_context>

<pallas_src>
import jax
import jax.numpy as jnp
import numpy as np
from jax.experimental import pallas as pl
from jax.experimental.pallas import tpu as pltpu


def _round_up(x, m):
    return ((x + m - 1) // m) * m


def graphsage_kernel(adj_ref, feat_ref, featdst_ref, invdeg2_ref,
                     w1_ref, w2_ref, b_ref, out_ref, acc_ref):
    k = pl.program_id(1)

    @pl.when(k == 0)
    def _init():
        acc_ref[...] = jnp.zeros_like(acc_ref)
        # dst-node linear is independent of the neighbor reduction: do it on the
        # first K step so it overlaps the pipeline ramp, and fold in (b1 + b2).
        h1 = jnp.dot(featdst_ref[...], w1_ref[...],
                     preferred_element_type=jnp.float32)
        out_ref[...] = (h1 + b_ref[...]).astype(out_ref.dtype)

    # Neighbor-sum over this K tile of source nodes.
    # Native bf16 x bf16 MXU path (adj is exactly 0/1 in bf16), f32 accumulate.
    acc_ref[...] += jnp.dot(adj_ref[...], feat_ref[...],
                            preferred_element_type=jnp.float32)

    @pl.when(k == pl.num_programs(1) - 1)
    def _finalize():
        ah = acc_ref[...] * invdeg2_ref[...]          # mean over nbrs, then /degs
        h2 = jnp.dot(ah, w2_ref[...], preferred_element_type=jnp.float32)
        out_ref[...] = (out_ref[...] + h2).astype(out_ref.dtype)


def _pick_tiles(n_v, n_u, f_in_p, f_out_p, tile_m, tile_k, vmem_budget):
    """Largest (tm, tk) that fit the VMEM budget (double-buffered pipeline)."""
    tm = min(tile_m, _round_up(n_v, 16))
    tk = min(tile_k, _round_up(n_u, 128))

    def footprint(tm_, tk_):
        return (2 * tm_ * tk_ * 2             # adj tiles      (bf16, 2 buffers)
                + 2 * tk_ * f_in_p * 2        # src feat tiles (bf16, 2 buffers)
                + 2 * tm_ * f_in_p * 4        # dst feat tile  (f32)
                + 2 * tm_ * 4                 # 1/deg^2 tile
                + 2 * 2 * f_in_p * f_out_p * 4  # w1, w2 resident (f32)
                + 2 * f_out_p * 4             # bias
                + 2 * tm_ * f_out_p * 4       # output tile
                + tm_ * f_in_p * 4)           # f32 accumulator scratch

    while footprint(tm, tk) > vmem_budget and (tm > 16 or tk > 128):
        if tm >= tk and tm > 16:
            tm = max(16, tm // 2)
        elif tk > 128:
            tk = max(128, tk // 2)
        else:
            break
    return tm, tk


def graphsage_forward(adj, feat, degs, w1, b1, w2, b2, *,
                      tile_m=512, tile_k=512):
    """adj:(Nv,Nu) 0/1, feat:(Nu,Fin), degs:(Nv,1), w*:(Fin,Fout), b*:(1,Fout) -> (Nv,Fout)."""
    n_v, n_u = adj.shape
    f_in = feat.shape[1]
    f_out = w1.shape[1]
    out_dtype = feat.dtype
    f32 = jnp.float32
    bf16 = jnp.bfloat16

    # Lane-aligned feature dims; 256-wide output N keeps v6e/v7x 2x256 MXUs full.
    f_in_p = _round_up(f_in, 128)
    f_out_p = _round_up(f_out, 256) if f_out > 128 else _round_up(f_out, 128)

    # Generation-aware VMEM budget (v7x: 64 MiB physical; v5e/v6e: 128 MiB).
    try:
        phys_vmem = int(pltpu.get_tpu_info().vmem_capacity_bytes)
    except Exception:
        phys_vmem = 64 << 20
    vmem_budget = min(phys_vmem * 3 // 4, 100 << 20)

    tm, tk = _pick_tiles(n_v, n_u, f_in_p, f_out_p, tile_m, tile_k, vmem_budget)
    n_v_p = _round_up(n_v, tm)
    n_u_p = _round_up(n_u, tk)

    # Pad directly in the streaming dtypes (no padded-f32 adjacency round-trip).
    adj_p = jnp.zeros((n_v_p, n_u_p), bf16).at[:n_v, :n_u].set(adj.astype(bf16))
    feat_p = jnp.zeros((n_u_p, f_in_p), bf16).at[:n_u, :f_in].set(feat.astype(bf16))
    featd_p = jnp.zeros((n_v_p, f_in_p), f32).at[:n_v, :f_in].set(
        feat[:n_v].astype(f32))
    deg_f32 = degs.astype(f32)
    inv2_p = jnp.zeros((n_v_p, 1), f32).at[:n_v, :].set(
        1.0 / (deg_f32 * deg_f32))                         # padded rows -> 0
    w1_p = jnp.zeros((f_in_p, f_out_p), f32).at[:f_in, :f_out].set(w1.astype(f32))
    w2_p = jnp.zeros((f_in_p, f_out_p), f32).at[:f_in, :f_out].set(w2.astype(f32))
    b_p = jnp.zeros((1, f_out_p), f32).at[:, :f_out].set((b1 + b2).astype(f32))

    grid = (n_v_p // tm, n_u_p // tk)
    n_row_tiles = grid[0]

    flops = (2 * n_v_p * n_u_p * f_in_p                  # neighbor aggregation
             + 2 * 2 * n_v_p * f_in_p * f_out_p)         # the two output linears
    bytes_accessed = (adj_p.size * 2
                      + feat_p.size * 2 * n_row_tiles    # feat re-streamed per row tile
                      + featd_p.size * 4
                      + inv2_p.size * 4
                      + (w1_p.size + w2_p.size + b_p.size) * 4
                      + n_v_p * f_out_p * jnp.dtype(out_dtype).itemsize)

    out_p = pl.pallas_call(
        graphsage_kernel,
        out_shape=jax.ShapeDtypeStruct((n_v_p, f_out_p), out_dtype),
        grid_spec=pltpu.PrefetchScalarGridSpec(
            num_scalar_prefetch=0,
            grid=grid,
            in_specs=[
                pl.BlockSpec((tm, tk), lambda i, k: (i, k)),            # adj tile (bf16)
                pl.BlockSpec((tk, f_in_p), lambda i, k: (k, 0)),        # src feats (bf16)
                pl.BlockSpec((tm, f_in_p), lambda i, k: (i, 0)),        # feat[0:num_dst]
                pl.BlockSpec((tm, 1), lambda i, k: (i, 0)),             # 1/deg^2
                pl.BlockSpec((f_in_p, f_out_p), lambda i, k: (0, 0)),   # w1
                pl.BlockSpec((f_in_p, f_out_p), lambda i, k: (0, 0)),   # w2
                pl.BlockSpec((1, f_out_p), lambda i, k: (0, 0)),        # b1 + b2
            ],
            out_specs=pl.BlockSpec((tm, f_out_p), lambda i, k: (i, 0)),
            scratch_shapes=[pltpu.VMEM((tm, f_in_p), jnp.float32)],
        ),
        compiler_params=pltpu.CompilerParams(
            dimension_semantics=("parallel", "arbitrary"),
            vmem_limit_bytes=vmem_budget),
        cost_estimate=pl.CostEstimate(flops=flops, transcendentals=0,
                                      bytes_accessed=bytes_accessed),
    )(adj_p, feat_p, featd_p, inv2_p, w1_p, w2_p, b_p)

    return out_p[:n_v, :f_out]


def graphsage_reference(adj, feat, degs, w1, b1, w2, b2):
    num_dst = adj.shape[0]
    agg = adj @ feat
    mean_h = agg / degs
    ah = mean_h / degs
    return feat[:num_dst] @ w1 + b1 + ah @ w2 + b2


if __name__ == "__main__":
    # small synthetic graph / features
    N_U = 16          # number of source (_U) nodes
    N_V = 8           # number of destination (_V) nodes
    IN_FEATS = 32
    OUT_FEATS = 32

    key = jax.random.PRNGKey(0)
    k_feat, k_adj, k_w1, k_b1, k_w2, k_b2 = jax.random.split(key, 6)

    feat = jax.random.normal(k_feat, (N_U, IN_FEATS), dtype=jnp.float32)

    # dense 0/1 adjacency; guarantee every destination node has >= 1 in-edge
    adj = (jax.random.uniform(k_adj, (N_V, N_U)) < 0.4).astype(jnp.float32)
    adj = adj.at[jnp.arange(N_V), jnp.arange(N_V)].set(1.0)
    degs = jnp.sum(adj, axis=1, keepdims=True)          # (N_V, 1) in-degrees

    # nn.Linear-style deterministic init: U(-k, k), k = 1/sqrt(in_feats);
    # weights stored pre-transposed as (F_in, F_out).
    bound = 1.0 / np.sqrt(IN_FEATS)
    w1 = jax.random.uniform(k_w1, (IN_FEATS, OUT_FEATS),
                            minval=-bound, maxval=bound, dtype=jnp.float32)
    b1 = jax.random.uniform(k_b1, (1, OUT_FEATS),
                            minval=-bound, maxval=bound, dtype=jnp.float32)
    w2 = jax.random.uniform(k_w2, (IN_FEATS, OUT_FEATS),
                            minval=-bound, maxval=bound, dtype=jnp.float32)
    b2 = jax.random.uniform(k_b2, (1, OUT_FEATS),
                            minval=-bound, maxval=bound, dtype=jnp.float32)

    out = graphsage_forward(adj, feat, degs, w1, b1, w2, b2)
    out = jax.block_until_ready(out)

    ref = graphsage_reference(adj, feat, degs, w1, b1, w2, b2)
    # feat is streamed to the aggregation in bf16 (adj 0/1 stays exact, accumulation
    # in f32); tolerance reflects that quantization of the neighbor-mean path only.
    np.testing.assert_allclose(np.asarray(out), np.asarray(ref),
                               rtol=5e-3, atol=5e-3)

    print("KERNEL_OK")
</pallas_src>

<mosaic_0001>
module attributes {stable_mosaic.version = 11 : i64} {
  func.func @graphsage_kernel(%arg0: i32, %arg1: i32, %arg2: memref<16x128xbf16, #tpu.memory_space<vmem>>, %arg3: memref<128x128xbf16, #tpu.memory_space<vmem>>, %arg4: memref<16x128xf32, #tpu.memory_space<vmem>>, %arg5: memref<16x1xf32, #tpu.memory_space<vmem>>, %arg6: memref<128x128xf32, #tpu.memory_space<vmem>>, %arg7: memref<128x128xf32, #tpu.memory_space<vmem>>, %arg8: memref<1x128xf32, #tpu.memory_space<vmem>>, %arg9: memref<16x128xf32, #tpu.memory_space<vmem>>, %arg10: memref<16x128xf32, #tpu.memory_space<vmem>>) attributes {dimension_semantics = [#tpu.dimension_semantics<parallel>, #tpu.dimension_semantics<arbitrary>], iteration_bounds = array<i64: 1, 1>, scalar_prefetch = 0 : i64, scratch_operands = 1 : i64, tpu.core_type = #tpu.core_type<tc>, window_params = [{transform_indices = @transform_0, window_bounds = array<i64: 16, 128>}, {transform_indices = @transform_1, window_bounds = array<i64: 128, 128>}, {transform_indices = @transform_2, window_bounds = array<i64: 16, 128>}, {transform_indices = @transform_3, window_bounds = array<i64: 16, 1>}, {pipeline_mode = #tpu.pipeline_mode<synchronous>, transform_indices = @transform_4, window_bounds = array<i64: 128, 128>}, {pipeline_mode = #tpu.pipeline_mode<synchronous>, transform_indices = @transform_5, window_bounds = array<i64: 128, 128>}, {pipeline_mode = #tpu.pipeline_mode<synchronous>, transform_indices = @transform_6, window_bounds = array<i64: 1, 128>}, {transform_indices = @transform_7, window_bounds = array<i64: 16, 128>}]} {
    %c0_i32 = arith.constant 0 : i32
    %0 = arith.cmpi eq, %arg1, %c0_i32 : i32
    %1 = arith.extui %0 : i1 to i32
    %c0_i32_0 = arith.constant 0 : i32
    %2 = arith.cmpi ne, %1, %c0_i32_0 : i32
    scf.if %2 {
      %cst_10 = arith.constant 0.000000e+00 : f32
      %12 = vector.broadcast %cst_10 : f32 to vector<16x128xf32>
      %c0_11 = arith.constant 0 : index
      %c0_12 = arith.constant 0 : index
      %13 = vector.load %arg10[%c0_11, %c0_12] : memref<16x128xf32, #tpu.memory_space<vmem>>, vector<16x128xf32>
      tpu.vector_store %arg10[%c0_11, %c0_12], %12 {strides = array<i32>} : memref<16x128xf32, #tpu.memory_space<vmem>>, vector<16x128xf32>,
      %c0_13 = arith.constant 0 : index
      %c0_14 = arith.constant 0 : index
      %14 = vector.load %arg4[%c0_13, %c0_14] : memref<16x128xf32, #tpu.memory_space<vmem>>, vector<16x128xf32>
      %c0_15 = arith.constant 0 : index
      %c0_16 = arith.constant 0 : index
      %15 = vector.load %arg6[%c0_15, %c0_16] : memref<128x128xf32, #tpu.memory_space<vmem>>, vector<128x128xf32>
      %cst_17 = arith.constant dense<0.000000e+00> : vector<16x128xf32>
      %16 = tpu.matmul %14, %15, %cst_17 {dimension_numbers = #tpu.dot_dimension_numbers<[1], [0], [0], [1], [0, 0, 1, 1], [], []>} : vector<16x128xf32>, vector<128x128xf32>, vector<16x128xf32> -> vector<16x128xf32>
      %c0_18 = arith.constant 0 : index
      %c0_19 = arith.constant 0 : index
      %17 = vector.load %arg8[%c0_18, %c0_19] : memref<1x128xf32, #tpu.memory_space<vmem>>, vector<1x128xf32>
      %18 = vector.broadcast %17 : vector<1x128xf32> to vector<16x128xf32>
      %19 = arith.addf %16, %18 : vector<16x128xf32>
      %c0_20 = arith.constant 0 : index
      %c0_21 = arith.constant 0 : index
      %20 = vector.load %arg9[%c0_20, %c0_21] : memref<16x128xf32, #tpu.memory_space<vmem>>, vector<16x128xf32>
      tpu.vector_store %arg9[%c0_20, %c0_21], %19 {strides = array<i32>} : memref<16x128xf32, #tpu.memory_space<vmem>>, vector<16x128xf32>,
    } else {
    }
    %c0 = arith.constant 0 : index
    %c0_1 = arith.constant 0 : index
    %3 = vector.load %arg10[%c0, %c0_1] : memref<16x128xf32, #tpu.memory_space<vmem>>, vector<16x128xf32>
    %c0_2 = arith.constant 0 : index
    %c0_3 = arith.constant 0 : index
    %4 = vector.load %arg2[%c0_2, %c0_3] : memref<16x128xbf16, #tpu.memory_space<vmem>>, vector<16x128xbf16>
    %c0_4 = arith.constant 0 : index
    %c0_5 = arith.constant 0 : index
    %5 = vector.load %arg3[%c0_4, %c0_5] : memref<128x128xbf16, #tpu.memory_space<vmem>>, vector<128x128xbf16>
    %cst = arith.constant dense<0.000000e+00> : vector<16x128xf32>
    %6 = tpu.matmul %4, %5, %cst {dimension_numbers = #tpu.dot_dimension_numbers<[1], [0], [0], [1], [0, 0, 1, 1], [], []>} : vector<16x128xbf16>, vector<128x128xbf16>, vector<16x128xf32> -> vector<16x128xf32>
    %7 = arith.addf %3, %6 : vector<16x128xf32>
    %c0_6 = arith.constant 0 : index
    %c0_7 = arith.constant 0 : index
    %8 = vector.load %arg10[%c0_6, %c0_7] : memref<16x128xf32, #tpu.memory_space<vmem>>, vector<16x128xf32>
    tpu.vector_store %arg10[%c0_6, %c0_7], %7 {strides = array<i32>} : memref<16x128xf32, #tpu.memory_space<vmem>>, vector<16x128xf32>,
    %c0_i32_8 = arith.constant 0 : i32
    %9 = arith.cmpi eq, %arg1, %c0_i32_8 : i32
    %10 = arith.extui %9 : i1 to i32
    %c0_i32_9 = arith.constant 0 : i32
    %11 = arith.cmpi ne, %10, %c0_i32_9 : i32
    scf.if %11 {
      %c0_10 = arith.constant 0 : index
      %c0_11 = arith.constant 0 : index
      %12 = vector.load %arg10[%c0_10, %c0_11] : memref<16x128xf32, #tpu.memory_space<vmem>>, vector<16x128xf32>
      %c0_12 = arith.constant 0 : index
      %c0_13 = arith.constant 0 : index
      %13 = vector.load %arg5[%c0_12, %c0_13] : memref<16x1xf32, #tpu.memory_space<vmem>>, vector<16x1xf32>
      %14 = vector.broadcast %13 : vector<16x1xf32> to vector<16x128xf32>
      %15 = arith.mulf %12, %14 : vector<16x128xf32>
      %c0_14 = arith.constant 0 : index
      %c0_15 = arith.constant 0 : index
      %16 = vector.load %arg7[%c0_14, %c0_15] : memref<128x128xf32, #tpu.memory_space<vmem>>, vector<128x128xf32>
      %cst_16 = arith.constant dense<0.000000e+00> : vector<16x128xf32>
      %17 = tpu.matmul %15, %16, %cst_16 {dimension_numbers = #tpu.dot_dimension_numbers<[1], [0], [0], [1], [0, 0, 1, 1], [], []>} : vector<16x128xf32>, vector<128x128xf32>, vector<16x128xf32> -> vector<16x128xf32>
      %c0_17 = arith.constant 0 : index
      %c0_18 = arith.constant 0 : index
      %18 = vector.load %arg9[%c0_17, %c0_18] : memref<16x128xf32, #tpu.memory_space<vmem>>, vector<16x128xf32>
      %19 = arith.addf %18, %17 : vector<16x128xf32>
      %c0_19 = arith.constant 0 : index
      %c0_20 = arith.constant 0 : index
      %20 = vector.load %arg9[%c0_19, %c0_20] : memref<16x128xf32, #tpu.memory_space<vmem>>, vector<16x128xf32>
      tpu.vector_store %arg9[%c0_19, %c0_20], %19 {strides = array<i32>} : memref<16x128xf32, #tpu.memory_space<vmem>>, vector<16x128xf32>,
    } else {
    }
    return
  }
  func.func @transform_0(%arg0: i32, %arg1: i32) -> (i32, i32) {
    %c0_i32 = arith.constant 0 : i32
    return %arg0, %arg1 : i32, i32
  }
  func.func @transform_1(%arg0: i32, %arg1: i32) -> (i32, i32) {
    %c0_i32 = arith.constant 0 : i32
    %c0_i32_0 = arith.constant 0 : i32
    return %arg1, %c0_i32 : i32, i32
  }
  func.func @transform_2(%arg0: i32, %arg1: i32) -> (i32, i32) {
    %c0_i32 = arith.constant 0 : i32
    %c0_i32_0 = arith.constant 0 : i32
    return %arg0, %c0_i32 : i32, i32
  }
  func.func @transform_3(%arg0: i32, %arg1: i32) -> (i32, i32) {
    %c0_i32 = arith.constant 0 : i32
    %c0_i32_0 = arith.constant 0 : i32
    return %arg0, %c0_i32 : i32, i32
  }
  func.func @transform_4(%arg0: i32, %arg1: i32) -> (i32, i32) {
    %c0_i32 = arith.constant 0 : i32
    %c0_i32_0 = arith.constant 0 : i32
    %c0_i32_1 = arith.constant 0 : i32
    return %c0_i32, %c0_i32_0 : i32, i32
  }
  func.func @transform_5(%arg0: i32, %arg1: i32) -> (i32, i32) {
    %c0_i32 = arith.constant 0 : i32
    %c0_i32_0 = arith.constant 0 : i32
    %c0_i32_1 = arith.constant 0 : i32
    return %c0_i32, %c0_i32_0 : i32, i32
  }
  func.func @transform_6(%arg0: i32, %arg1: i32) -> (i32, i32) {
    %c0_i32 = arith.constant 0 : i32
    %c0_i32_0 = arith.constant 0 : i32
    %c0_i32_1 = arith.constant 0 : i32
    return %c0_i32, %c0_i32_0 : i32, i32
  }
  func.func @transform_7(%arg0: i32, %arg1: i32) -> (i32, i32) {
    %c0_i32 = arith.constant 0 : i32
    %c0_i32_0 = arith.constant 0 : i32
    return %arg0, %c0_i32 : i32, i32
  }
}

</mosaic_0001>

<bundles_post_ra>
// kernel: tpu_custom_call.1
= control target key start
LH: loop header
LB: loop body
LE: loop exit
PB: predicated region body
PF: predicated region fallthrough
CT: control target
= control target key end

     0   :  { %12 = vsyncpa [#allocation4], 0  ;;  %s888_s0 = inlined_call_operand.vmem [shape: bf16[16,128], index: 0, kind: input, shape index: {}]   ;;  %s889_s1 = inlined_call_operand.hbm [shape: bf16[128,128], index: 1, kind: input, shape index: {}]   ;;  %s890_s2 = inlined_call_operand.vmem [shape: f32[16,128], index: 2, kind: input, shape index: {}]   ;;  %s891_s3 = inlined_call_operand.vmem [shape: f32[16,1], index: 3, kind: input, shape index: {}]   ;;  %s892_s4 = inlined_call_operand.hbm [shape: f32[128,128], index: 4, kind: input, shape index: {}]   ;;  %s893_s5 = inlined_call_operand.hbm [shape: f32[128,128], index: 5, kind: input, shape index: {}]   ;;  %s894_s6 = inlined_call_operand.vmem [shape: f32[1,128], index: 6, kind: input, shape index: {}]   ;;  %s895_s7 = inlined_call_operand.hbm [shape: f32[16,128], index: 7, kind: output, shape index: {}]  }
   0x1   :  { %13 = vsyncpa [#allocation7], 0 }
   0x2   :  { %14 = vsyncpa [#allocation5], 0  ;;  %s762_s24 = smov [#allocation6]   ;;  %s668_s28 = scalar_lea.hbm %s892_s4, 2048 }
   0x3   :  { %s38_s25 = sshll.u32 %s762_s24, 4  ;;  %p669_p0 = scmp.ne.s32.totalorder %s892_s4, %s668_s28  ;;  %s39_s25 = int_to_ptr.vmem [resolvable:$true] %s38_s25 }
   0x4   :  { %p672_p1 = scmp.lt.u32.totalorder %s668_s28, %s892_s4 }
   0x6   :  { %p674_p2 = pnand %p672_p1, %p669_p0 }
   0x8   :  { %677 = shalt.err (!%p674_p2)
}
   0x9   :  { %s678_s10 = scalar_lea.vmem %s39_s25, 2048  ;;  %p683_p4 = scmp.lt.s32.totalorder %s39_s25, %s39_s25 }
   0xa   :  { %p679_p3 = scmp.ne.s32.totalorder %s39_s25, %s678_s10  ;;  %p684_p5 = scmp.lt.s32.totalorder %s678_s10, %s678_s10 }
   0xc   :  { %p685_p6 = por %p684_p5, %p683_p4 }
   0xe   :  { %p686_p7 = pnand %p685_p6, %p679_p3 }
  0x10   :  { %689 = shalt.err (!%p686_p7)
}
  0x11   :  { %s763_s11 = smov 128   ;;  %s764_s12 = smov 8  }
  0x12   :  { %44 = dma.hbm_to_vmem [thread:$0]  %s892_s4, 2048, %s39_s25, [#allocation7], %s763_s11, %s763_s11, %s764_s12  }
  0x13   :  { %s765_s15 = smov [#allocation3]   ;;  %s690_s19 = scalar_lea.hbm %s889_s1, 1024 }
  0x14   :  { %s22_s16 = sshll.u32 %s765_s15, 4  ;;  %p691_p8 = scmp.ne.s32.totalorder %s889_s1, %s690_s19  ;;  %s23_s16 = int_to_ptr.vmem [resolvable:$true] %s22_s16 }
  0x15   :  { %p694_p9 = scmp.lt.u32.totalorder %s690_s19, %s889_s1 }
  0x17   :  { %p696_p10 = pnand %p694_p9, %p691_p8 }
  0x19   :  { %699 = shalt.err (!%p696_p10)
}
  0x1a   :  { %s700_s24 = scalar_lea.vmem %s23_s16, 1024  ;;  %p705_p12 = scmp.lt.s32.totalorder %s23_s16, %s23_s16 }
  0x1b   :  { %p701_p11 = scmp.ne.s32.totalorder %s23_s16, %s700_s24  ;;  %p706_p13 = scmp.lt.s32.totalorder %s700_s24, %s700_s24 }
  0x1d   :  { %p707_p0 = por %p706_p13, %p705_p12 }
  0x1f   :  { %p708_p1 = pnand %p707_p0, %p701_p11 }
  0x21   :  { %711 = shalt.err (!%p708_p1)
}
  0x22   :  { %s766_s4 = smov 64   ;;  %s767_s25 = smov 4  }
  0x23   :  { %28 = dma.hbm_to_vmem [thread:$0]  %s889_s1, 1024, %s23_s16, [#allocation4], %s766_s4, %s766_s4, %s767_s25  }
  0x24   :  { %s768_s28 = smov [#allocation8]   ;;  %s712_s9 = scalar_lea.hbm %s893_s5, 2048 }
  0x25   :  { %s50_s29 = sshll.u32 %s768_s28, 4  ;;  %p713_p2 = scmp.ne.s32.totalorder %s893_s5, %s712_s9  ;;  %s51_s29 = int_to_ptr.vmem [resolvable:$true] %s50_s29 }
  0x26   :  { %p716_p3 = scmp.lt.u32.totalorder %s712_s9, %s893_s5 }
  0x28   :  { %p718_p4 = pnand %p716_p3, %p713_p2 }
  0x2a   :  { %721 = shalt.err (!%p718_p4)
}
  0x2b   :  { %s722_s17 = scalar_lea.vmem %s51_s29, 2048  ;;  %p727_p6 = scmp.lt.s32.totalorder %s51_s29, %s51_s29 }
  0x2c   :  { %p723_p5 = scmp.ne.s32.totalorder %s51_s29, %s722_s17  ;;  %p728_p7 = scmp.lt.s32.totalorder %s722_s17, %s722_s17 }
  0x2e   :  { %p729_p8 = por %p728_p7, %p727_p6 }
  0x30   :  { %p730_p9 = pnand %p729_p8, %p723_p5 }
  0x32   :  { %733 = shalt.err (!%p730_p9)
}
  0x33   :  { %56 = dma.hbm_to_vmem [thread:$0]  %s893_s5, 2048, %s51_s29, [#allocation7], %s763_s11, %s763_s11, %s764_s12  }
  0x34   :  { %756 = dma.done.wait [#allocation4], 1024  }
  0x35   :  { %757 = vsyncadd [#allocation4], 4294966272 }
  0x36   :  { %758 = dma.done.wait [#allocation7], 4096  }
  0x37   :  { %759 = vsyncadd [#allocation7], 4294963200  ;;  %v769_v0 = vmov 0.0   ;;  %vm770_vm0 = vmmov 0   ;;  %v771_v1 = vmov 0   ;;  %v659_v2 = vld [vmem:[#allocation3] sm:$0xff]  }
  0x38   :  { %520 = vmatprep.subr.bf16.mxu1 %v769_v0  ;;  %536 = vmatprep.mubr.msk.bf16.mxu1 %vm770_vm0, %v769_v0  ;;  %v660_v3 = vld [vmem:[#allocation3 + $0x8] sm:$0xff]   ;;  %v661_v4 = vld [vmem:[#allocation3 + $0x10] sm:$0xff]   ;;  %v662_v5 = vld [vmem:[#allocation3 + $0x18] sm:$0xff]   ;;  %s772_s25 = smov [#allocation9]  }
  0x39   :  { %658 = vset.pattern.permute.xlu0 %v771_v1  ;;  %521 = vmatpush3.bf16.msra.mxu1 %v659_v2  ;;  %v301_v6 = vld [vmem:[%s891_s3] sm:$0xff]  ;;  %v78_v8 = vld [vmem:[#allocation6 + $0x8] sm:$0xff]  ;;  %v79_v9 = vld [vmem:[#allocation6 + $0x10] sm:$0xff]  ;;  %s417_s26 = sshll.u32 %s772_s25, 4  ;;  %s418_s26 = int_to_ptr.vmem [resolvable:$true] %s417_s26 }
  0x3a   :  { %522 = vmatprep.subr.bf16.mxu1 %v769_v0  ;;  %v77_v7 = vld [vmem:[#allocation6] sm:$0xff]  ;;  %305 = vperm.xlu0 %658, %v301_v6   ;;  %v80_v10 = vld [vmem:[#allocation6 + $0x18] sm:$0xff]  ;;  %v302_v11 = vld [vmem:[%s891_s3 + $0x8] sm:$0xff]  ;;  %s734_s27 = scalar_lea.vmem %s418_s26, 256  ;;  %p739_p11 = scmp.lt.s32.totalorder %s418_s26, %s418_s26 }
  0x3b   :  { %v575_v12 = vpack.c.bf16 %v78_v8, %v77_v7  ;;  %v579_v13 = vpack.c.bf16 %v80_v10, %v79_v9  ;;  %v81_v14 = vld [vmem:[#allocation6 + $0x20] sm:$0xff]  ;;  %v82_v15 = vld [vmem:[#allocation6 + $0x28] sm:$0xff]  ;;  %v83_v19 = vld [vmem:[#allocation6 + $0x30] sm:$0xff]  ;;  %p735_p10 = scmp.ne.s32.totalorder %s418_s26, %s734_s27  ;;  %p740_p12 = scmp.lt.s32.totalorder %s734_s27, %s734_s27 }
  0x3c   :  { %v663_v16 = vld [vmem:[#allocation3 + $0x20] sm:$0xff]   ;;  %v583_v18 = vpack.c.bf16 %v82_v15, %v81_v14  ;;  %v84_v20 = vld [vmem:[#allocation6 + $0x38] sm:$0xff]  ;;  %v664_v21 = vld [vmem:[#allocation3 + $0x28] sm:$0xff]  }
  0x3d   :  { %523 = vmatpush3.bf16.msra.mxu1 %v660_v3  ;;  %576 = vmatprep.subr.bf16.mxu0 %v575_v12  ;;  %v75_v17 = vld [vmem:[%s890_s2] sm:$0xff]  ;;  %v587_v22 = vpack.c.bf16 %v84_v20, %v83_v19  ;;  %v86_v24 = vld [vmem:[#allocation6 + $0x48] sm:$0xff]  ;;  %v665_v25 = vld [vmem:[#allocation3 + $0x30] sm:$0xff]   ;;  %p741_p13 = por %p740_p12, %p739_p11 }
  0x3e   :  { %524 = vmatprep.subr.bf16.mxu1 %v769_v0  ;;  %310 = vperm.xlu0 %658, %v302_v11   ;;  %v85_v23 = vld [vmem:[#allocation6 + $0x40] sm:$0xff]  ;;  %v87_v27 = vld [vmem:[#allocation6 + $0x50] sm:$0xff]  ;;  %v88_v28 = vld [vmem:[#allocation6 + $0x58] sm:$0xff] }
  0x3f   :  { %578 = vmatpush3.bf16.msra.mxu0 %v575_v12  ;;  %517 = vmatprep.mubr.f32.mxu0 %v75_v17  ;;  %v591_v26 = vpack.c.bf16 %v86_v24, %v85_v23  ;;  %v666_v29 = vld [vmem:[#allocation3 + $0x38] sm:$0xff]   ;;  %v595_v30 = vpack.c.bf16 %v88_v28, %v87_v27  ;;  %v667_v31 = vld [vmem:[%s888_s0] sm:$0xff]   ;;  %v90_v33 = vld [vmem:[#allocation6 + $0x68] sm:$0xff]  ;;  %p742_p0 = pnand %p741_p13, %p735_p10 }
  0x40   :  { %580 = vmatprep.subr.bf16.mxu0 %v579_v13  ;;  %v89_v32 = vld [vmem:[#allocation6 + $0x60] sm:$0xff]  ;;  %v91_v35 = vld [vmem:[#allocation6 + $0x70] sm:$0xff]  ;;  %v92_v36 = vld [vmem:[#allocation6 + $0x78] sm:$0xff] }
  0x41   :  { %525 = vmatpush3.bf16.msra.mxu1 %v661_v4  ;;  %v599_v34 = vpack.c.bf16 %v90_v33, %v89_v32  ;;  %v603_v37 = vpack.c.bf16 %v92_v36, %v91_v35  ;;  %v315_v38 = vld [vmem:[#allocation8] sm:$0xff]  ;;  %v316_v39 = vld [vmem:[#allocation8 + $0x8] sm:$0xff]  ;;  %v317_v41 = vld [vmem:[#allocation8 + $0x10] sm:$0xff] }
  0x42   :  { %526 = vmatprep.subr.bf16.mxu1 %v769_v0  ;;  %v607_v40 = vpack.c.bf16 %v316_v39, %v315_v38  ;;  %v318_v42 = vld [vmem:[#allocation8 + $0x18] sm:$0xff]  ;;  %v76_v43 = vld [vmem:[%s890_s2 + $0x8] sm:$0xff]  ;;  %v319_v45 = vld [vmem:[#allocation8 + $0x20] sm:$0xff] }
  0x43   :  { %582 = vmatpush3.bf16.msra.mxu0 %v579_v13  ;;  %v611_v44 = vpack.c.bf16 %v318_v42, %v317_v41  ;;  %v320_v46 = vld [vmem:[#allocation8 + $0x28] sm:$0xff]  ;;  %v321_v48 = vld [vmem:[#allocation8 + $0x30] sm:$0xff]  ;;  %v322_v49 = vld [vmem:[#allocation8 + $0x38] sm:$0xff] }
  0x44   :  { %584 = vmatprep.subr.bf16.mxu0 %v583_v18  ;;  %v615_v47 = vpack.c.bf16 %v320_v46, %v319_v45  ;;  %v619_v50 = vpack.c.bf16 %v322_v49, %v321_v48  ;;  %v323_v51 = vld [vmem:[#allocation8 + $0x40] sm:$0xff]  ;;  %v324_v52 = vld [vmem:[#allocation8 + $0x48] sm:$0xff]  ;;  %v325_v54 = vld [vmem:[#allocation8 + $0x50] sm:$0xff] }
  0x45   :  { %527 = vmatpush3.bf16.msra.mxu1 %v662_v5  ;;  %v623_v53 = vpack.c.bf16 %v324_v52, %v323_v51  ;;  %v326_v55 = vld [vmem:[#allocation8 + $0x58] sm:$0xff]  ;;  %v327_v57 = vld [vmem:[#allocation8 + $0x60] sm:$0xff]  ;;  %v328_v58 = vld [vmem:[#allocation8 + $0x68] sm:$0xff] }
  0x46   :  { %528 = vmatprep.subr.bf16.mxu1 %v769_v0  ;;  %v627_v56 = vpack.c.bf16 %v326_v55, %v325_v54  ;;  %v631_v59 = vpack.c.bf16 %v328_v58, %v327_v57  ;;  %v329_v60 = vld [vmem:[#allocation8 + $0x70] sm:$0xff]  ;;  %v330_v61 = vld [vmem:[#allocation8 + $0x78] sm:$0xff]  ;;  %v430_v7 = vld [vmem:[%s894_s6] ss:$0 sm:$0xff] }
  0x47   :  { %586 = vmatpush3.bf16.msra.mxu0 %v583_v18  ;;  %v635_v62 = vpack.c.bf16 %v330_v61, %v329_v60 }
  0x48   :  { %588 = vmatprep.subr.bf16.mxu0 %v587_v22 }
  0x49   :  { %529 = vmatpush3.bf16.msra.mxu1 %v663_v16 }
  0x4a   :  { %530 = vmatprep.subr.bf16.mxu1 %v769_v0 }
  0x4b   :  { %590 = vmatpush3.bf16.msra.mxu0 %v587_v22 }
  0x4c   :  { %592 = vmatprep.subr.bf16.mxu0 %v591_v26 }
  0x4d   :  { %531 = vmatpush3.bf16.msra.mxu1 %v664_v21 }
  0x4e   :  { %532 = vmatprep.subr.bf16.mxu1 %v769_v0 }
  0x4f   :  { %594 = vmatpush3.bf16.msra.mxu0 %v591_v26 }
  0x50   :  { %596 = vmatprep.subr.bf16.mxu0 %v595_v30 }
  0x51   :  { %533 = vmatpush3.bf16.msra.mxu1 %v665_v25 }
  0x52   :  { %534 = vmatprep.subr.bf16.mxu1 %v769_v0 }
  0x53   :  { %598 = vmatpush3.bf16.msra.mxu0 %v595_v30 }
  0x54   :  { %600 = vmatprep.subr.bf16.mxu0 %v599_v34 }
  0x55   :  { %535 = vmatpush3.bf16.msra.mxu1 %v666_v29 }
  0x57   :  { %602 = vmatpush3.bf16.msra.mxu0 %v599_v34 }
  0x58   :  { %537 = vmatmul.mubr.bf16.vlgmr.msra.gmra.mrb[0].mxu1 %v667_v31  ;;  %604 = vmatprep.subr.bf16.mxu0 %v603_v37 }
  0x5b   :  { %606 = vmatpush3.bf16.msra.mxu0 %v603_v37 }
  0x5c   :  { %608 = vmatprep.subr.bf16.mxu0 %v607_v40 }
  0x5e   :  { %518 = vmatmul.mubr.f32.vlgmr.msra.gmra.mrb[0].mxu0 %v76_v43 }
  0x5f   :  { %610 = vmatpush3.bf16.msra.mxu0 %v607_v40 }
  0x60   :  { %612 = vmatprep.subr.bf16.mxu0 %v611_v44 }
  0x63   :  { %614 = vmatpush3.bf16.msra.mxu0 %v611_v44 }
  0x64   :  { %616 = vmatprep.subr.bf16.mxu0 %v615_v47 }
  0x67   :  { %618 = vmatpush3.bf16.msra.mxu0 %v615_v47 }
  0x68   :  { %620 = vmatprep.subr.bf16.mxu0 %v619_v50 }
  0x6b   :  { %622 = vmatpush3.bf16.msra.mxu0 %v619_v50 }
  0x6c   :  { %624 = vmatprep.subr.bf16.mxu0 %v623_v53 }
  0x6f   :  { %626 = vmatpush3.bf16.msra.mxu0 %v623_v53 }
  0x70   :  { %628 = vmatprep.subr.bf16.mxu0 %v627_v56 }
  0x73   :  { %630 = vmatpush3.bf16.msra.mxu0 %v627_v56 }
  0x74   :  { %632 = vmatprep.subr.bf16.mxu0 %v631_v59 }
  0x77   :  { %634 = vmatpush3.bf16.msra.mxu0 %v631_v59 }
  0x78   :  { %636 = vmatprep.subr.bf16.mxu0 %v635_v62 }
  0x7b   :  { %638 = vmatpush3.bf16.msra.mxu0 %v635_v62 }
  0xb9   :  { %v306_v63 = vpop.permute.xlu0 %305 }
  0xbd   :  { %v311_v3 = vpop.permute.xlu0 %310 }
 0x12b   :  { %v285_v0 = vpop.f32.mrb[0].mxu1 }
 0x12c   :  { %v313_v1 = vmul.f32 %v306_v63, %v285_v0  ;;  %v538_v2 = vpop.f32.mrb[1].mxu1 }
 0x12d   :  { %v288_v4 = vpop.f32.mrb[2].mxu1 }
 0x12e   :  { %v314_v5 = vmul.f32 %v311_v3, %v288_v4  ;;  %v539_v6 = vpop.f32.mrb[3].mxu1  ;;  %572 = vmatprep.mubr.f32.mxu0 %v313_v1 }
 0x130   :  { %573 = vmatmul.mubr.f32.vlgmr.msra.gmra.mrb[0].mxu0 %v314_v5 }
 0x203   :  { %v574_v8 = vpop.f32.mrb[0].mxu0 }
 0x204   :  { %v641_v9 = vadd.f32 %v574_v8, %v430_v7  ;;  %v397_v10 = vpop.f32.mrb[1].mxu0 }
 0x205   :  { %v644_v11 = vadd.f32 %v430_v7, %v397_v10 }
 0x206   :  { %411 = vst [vmem:[#allocation9 + $0x8] sm:$0xff] %v641_v9 }
 0x207   :  { %410 = vst [vmem:[#allocation9] sm:$0xff] %v644_v11 }
 0x208   :  { %745 = shalt.err (!%p742_p0)
}
 0x209   :  { %s746_s6 = scalar_lea.hbm %s895_s7, 256 }
 0x20a   :  { %p747_p1 = scmp.ne.s32.totalorder %s895_s7, %s746_s6  ;;  %p750_p2 = scmp.lt.u32.totalorder %s746_s6, %s895_s7 }
 0x20c   :  { %p752_p3 = pnand %p750_p2, %p747_p1 }
 0x20e   :  { %755 = shalt.err (!%p752_p3)
}
 0x20f   :  { %423 = dma.vmem_to_hbm [thread:$0]  %s418_s26, 256, %s895_s7, [#allocation5], %s763_s11, %s763_s11, %s764_s12  }
 0x210   :  { %760 = dma.done.wait [#allocation5], 256  }
 0x211   :  { %761 = vsyncadd [#allocation5], 4294967040 }
 0x212   :  { %427 = vsyncpa [#allocation4], 1 }
 0x213   :  { %428 = vsyncpa [#allocation7], 1 }
 0x214   :  { %429 = vsyncpa [#allocation5], 1 }

</bundles_post_ra>
